<compile_context>
chip_gen: v7x
topology: tpu7x:2x2x1
jax: 0.10.0
libtpu: 0.0.40
codegen_flags: <defaults>
</compile_context>

<pallas_src>
import functools

import jax
import jax.numpy as jnp
import numpy as np
from jax.experimental import pallas as pl
from jax.experimental.pallas import tpu as pltpu

EPS = 1e-5
EXPANSION = 4
_VMEM_LIMIT = 32 * 1024 * 1024  # scoped VMEM budget, safe on v5e / v6e / v7x


# --------------------------------------------------------------------------
# tiling helpers
# --------------------------------------------------------------------------
def _choose_rows(m, target):
    """Largest row tile <= target that divides m and is a multiple of 8
    (falls back to the full extent, which is always a legal block)."""
    if m <= target:
        return m
    t = (target // 8) * 8
    while t >= 8:
        if m % t == 0:
            return t
        t -= 8
    return m


def _choose_divisor(n, target):
    t = min(n, max(1, target))
    while t > 1:
        if n % t == 0:
            return t
        t -= 1
    return 1


def _cparams():
    return pltpu.CompilerParams(dimension_semantics=("parallel",),
                                vmem_limit_bytes=_VMEM_LIMIT)


# --------------------------------------------------------------------------
# Kernel 1: row-tiled 1x1 conv (BN folded into weights) + bias + optional ReLU
# --------------------------------------------------------------------------
def _mm_bias_kernel(x_ref, w_ref, b_ref, o_ref, *, relu):
    y = jnp.dot(x_ref[...], w_ref[...], preferred_element_type=jnp.float32)
    y = y + b_ref[...]
    if relu:
        y = jnp.maximum(y, 0.0)
    o_ref[...] = y.astype(o_ref.dtype)


def conv1x1_bn_act(x2d, w, b, *, relu, tile_rows):
    m, cin = x2d.shape
    cout = w.shape[1]
    tm = _choose_rows(m, tile_rows)
    return pl.pallas_call(
        functools.partial(_mm_bias_kernel, relu=relu),
        out_shape=jax.ShapeDtypeStruct((m, cout), jnp.float32),
        grid=(m // tm,),
        in_specs=[pl.BlockSpec((tm, cin), lambda i: (i, 0)),
                  pl.BlockSpec((cin, cout), lambda i: (0, 0)),
                  pl.BlockSpec((1, cout), lambda i: (0, 0))],
        out_specs=pl.BlockSpec((tm, cout), lambda i: (i, 0)),
        compiler_params=_cparams(),
    )(x2d, w, b)


# --------------------------------------------------------------------------
# Kernel 1b: 1x1 conv + bias + residual add + ReLU (identity shortcut path)
# --------------------------------------------------------------------------
def _mm_bias_add_relu_kernel(x_ref, id_ref, w_ref, b_ref, o_ref):
    y = jnp.dot(x_ref[...], w_ref[...], preferred_element_type=jnp.float32)
    y = y + b_ref[...] + id_ref[...]
    o_ref[...] = jnp.maximum(y, 0.0).astype(o_ref.dtype)


def conv1x1_bn_add_relu(x2d, id2d, w, b, *, tile_rows):
    m, cin = x2d.shape
    cout = w.shape[1]
    tm = _choose_rows(m, tile_rows)
    return pl.pallas_call(
        _mm_bias_add_relu_kernel,
        out_shape=jax.ShapeDtypeStruct((m, cout), jnp.float32),
        grid=(m // tm,),
        in_specs=[pl.BlockSpec((tm, cin), lambda i: (i, 0)),
                  pl.BlockSpec((tm, cout), lambda i: (i, 0)),
                  pl.BlockSpec((cin, cout), lambda i: (0, 0)),
                  pl.BlockSpec((1, cout), lambda i: (0, 0))],
        out_specs=pl.BlockSpec((tm, cout), lambda i: (i, 0)),
        compiler_params=_cparams(),
    )(x2d, id2d, w, b)


# --------------------------------------------------------------------------
# Kernel 2: 3x3 conv (pad=1, stride=1) + bias + ReLU, one image per grid step.
# f32 accumulator lives in a VMEM scratch.
# --------------------------------------------------------------------------
def _conv3x3_kernel(xp_ref, w_ref, b_ref, o_ref, acc_ref):
    # xp_ref: (1, H+2, W+2, C) zero-padded image; w_ref: (9, C, Cout) BN-folded
    _, hp, wp, c = xp_ref.shape
    h, w = hp - 2, wp - 2
    for dy in range(3):
        for dx in range(3):
            # TODO(synk): the dx shifts could use pltpu.roll (XLU) / halo'd row
            # tiles instead of sublane-crossing slices of the VMEM tile.
            patch = xp_ref[0, dy:dy + h, dx:dx + w, :].reshape(h * w, c)
            contrib = jnp.dot(patch, w_ref[dy * 3 + dx],
                              preferred_element_type=jnp.float32)
            if dy == 0 and dx == 0:
                acc_ref[...] = contrib
            else:
                acc_ref[...] += contrib
    y = jnp.maximum(acc_ref[...] + b_ref[...], 0.0)
    o_ref[...] = y.reshape(o_ref.shape).astype(o_ref.dtype)


def conv3x3_bn_relu(x_nhwc, w9, b):
    n, h, w, c = x_nhwc.shape
    cout = w9.shape[-1]
    # TODO(synk): fold the zero padding into the kernel (in-kernel padded VMEM
    # scratch or halo DMA) to drop this extra HBM read+write of the activation.
    xp = jnp.pad(x_nhwc, ((0, 0), (1, 1), (1, 1), (0, 0)))
    return pl.pallas_call(
        _conv3x3_kernel,
        out_shape=jax.ShapeDtypeStruct((n, h, w, cout), jnp.float32),
        grid=(n,),
        in_specs=[pl.BlockSpec((1, h + 2, w + 2, c), lambda i: (i, 0, 0, 0)),
                  pl.BlockSpec((9, c, cout), lambda i: (0, 0, 0)),
                  pl.BlockSpec((1, cout), lambda i: (0, 0))],
        out_specs=pl.BlockSpec((1, h, w, cout), lambda i: (i, 0, 0, 0)),
        scratch_shapes=[pltpu.VMEM((h * w, cout), jnp.float32)],
        compiler_params=_cparams(),
    )(xp, w9, b)


# --------------------------------------------------------------------------
# Kernel 3 (fused epilogue):
#   avgpool(stride) + conv3 + bn3 + [avgpool + downsample conv + bnd]
#   + residual add + ReLU  -- single pass over HBM.
# Inputs arrive window-viewed as (N*H, Wo, k, C) (a pure contiguous reshape);
# BN scales and the 1/k^2 pooling factor are pre-folded into the weights.
# --------------------------------------------------------------------------
def _pool_fused_kernel(a_ref, id_ref, w3_ref, wd_ref, b_ref, o_ref, *, k):
    tr, wo, _, c2 = a_ref.shape          # tr = tb * k rows of the un-pooled map
    cin = id_ref.shape[-1]
    tb = tr // k

    def pooled_sum(ref, cdim):
        v = ref[...].astype(jnp.float32)            # (tr, wo, k, cdim)
        v = v.sum(axis=2)                           # kx taps   -> (tr, wo, cdim)
        v = v.reshape(tb, k, wo, cdim).sum(axis=1)  # ky taps   -> (tb, wo, cdim)
        return v.reshape(tb * wo, cdim)

    a = pooled_sum(a_ref, c2)                       # main branch (conv2 output)
    idn = pooled_sum(id_ref, cin)                   # residual / downsample input
    y = jnp.dot(a, w3_ref[...], preferred_element_type=jnp.float32)
    y = y + jnp.dot(idn, wd_ref[...], preferred_element_type=jnp.float32)
    y = jnp.maximum(y + b_ref[...], 0.0)
    o_ref[...] = y.reshape(o_ref.shape).astype(o_ref.dtype)


def fused_pool_conv_residual(out2_nhwc, x_nhwc, w3, wd, b, *, k, tile_rows):
    n, h, w, c2 = out2_nhwc.shape
    cin = x_nhwc.shape[-1]
    cout = w3.shape[1]
    ho, wo = h // k, w // k
    # Window view is a free contiguous reshape (no XLA transpose over HBM).
    a = out2_nhwc.reshape(n * h, wo, k, c2)
    ident = x_nhwc.reshape(n * h, wo, k, cin)
    tb = _choose_divisor(n * ho, max(1, tile_rows // max(wo, 1)))
    tr = tb * k
    return pl.pallas_call(
        functools.partial(_pool_fused_kernel, k=k),
        out_shape=jax.ShapeDtypeStruct((n * ho, wo, cout), jnp.float32),
        grid=((n * ho) // tb,),
        in_specs=[pl.BlockSpec((tr, wo, k, c2), lambda i: (i, 0, 0, 0)),
                  pl.BlockSpec((tr, wo, k, cin), lambda i: (i, 0, 0, 0)),
                  pl.BlockSpec((c2, cout), lambda i: (0, 0)),
                  pl.BlockSpec((cin, cout), lambda i: (0, 0)),
                  pl.BlockSpec((1, cout), lambda i: (0, 0))],
        out_specs=pl.BlockSpec((tb, wo, cout), lambda i: (i, 0, 0)),
        compiler_params=_cparams(),
    )(a, ident, w3, wd, b)


# --------------------------------------------------------------------------
# Parameter construction (mirrors the nn.Module shapes) + BN/pool folding
# --------------------------------------------------------------------------
def _bn_init(key, c):
    k1, k2, k3, k4 = jax.random.split(key, 4)
    gamma = jax.random.uniform(k1, (c,), jnp.float32, 0.5, 1.5)
    beta = jax.random.normal(k2, (c,), jnp.float32) * 0.1
    mean = jax.random.normal(k3, (c,), jnp.float32) * 0.1
    var = jax.random.uniform(k4, (c,), jnp.float32, 0.5, 1.5)
    return (gamma, beta, mean, var)


def init_raw_params(key, inplanes, planes, stride):
    cout3 = planes * EXPANSION
    ks = jax.random.split(key, 8)
    raw = {
        'conv1': jax.random.normal(ks[0], (planes, inplanes, 1, 1), jnp.float32) * 0.2,
        'bn1': _bn_init(ks[1], planes),
        'conv2': jax.random.normal(ks[2], (planes, planes, 3, 3), jnp.float32) * 0.1,
        'bn2': _bn_init(ks[3], planes),
        'conv3': jax.random.normal(ks[4], (cout3, planes, 1, 1), jnp.float32) * 0.2,
        'bn3': _bn_init(ks[5], cout3),
    }
    if stride > 1 or inplanes != cout3:
        raw['convd'] = jax.random.normal(ks[6], (cout3, inplanes, 1, 1), jnp.float32) * 0.2
        raw['bnd'] = _bn_init(ks[7], cout3)
    return raw


def _fold_bn(gamma, beta, mean, var):
    scale = gamma / jnp.sqrt(var + EPS)
    bias = beta - mean * scale
    return scale, bias


def kernel_params(raw, stride):
    """Fold eval-mode BN scales (and the 1/stride^2 avg-pool factor) into the
    conv weights; kernels then only add a per-channel bias."""
    p = {}
    s1, b1 = _fold_bn(*raw['bn1'])
    p['w1'] = raw['conv1'][:, :, 0, 0].T * s1[None, :]                 # (Cin, planes)
    p['b1'] = b1.reshape(1, -1)

    s2, b2 = _fold_bn(*raw['bn2'])
    co, ci = raw['conv2'].shape[:2]
    w2 = jnp.transpose(raw['conv2'], (2, 3, 1, 0)).reshape(9, ci, co)  # (9, Cin, Cout)
    p['w2'] = w2 * s2[None, None, :]
    p['b2'] = b2.reshape(1, -1)

    s3, b3 = _fold_bn(*raw['bn3'])
    inv_kk = 1.0 / float(stride * stride)
    p['w3'] = raw['conv3'][:, :, 0, 0].T * s3[None, :] * inv_kk
    if 'convd' in raw:
        sd, bd = _fold_bn(*raw['bnd'])
        p['wd'] = raw['convd'][:, :, 0, 0].T * sd[None, :] * inv_kk
        p['b3'] = (b3 + bd).reshape(1, -1)     # combined bias of the fused epilogue
    else:
        p['b3'] = b3.reshape(1, -1)
    return p


# --------------------------------------------------------------------------
# Bottleneck forward (Pallas)
# --------------------------------------------------------------------------
def bottleneck_forward(x_nchw, p, stride, *, tile_rows=512):
    # NCHW <-> NHWC conversion happens only at the module boundary (a full
    # ResNet stack would stay NHWC throughout).
    x = jnp.transpose(x_nchw, (0, 2, 3, 1)).astype(jnp.float32)
    n, h, w, cin = x.shape
    c2 = p['w1'].shape[1]
    cout = p['w3'].shape[1]

    # conv1 (1x1) + bn1 + relu
    out1 = conv1x1_bn_act(x.reshape(n * h * w, cin), p['w1'], p['b1'],
                          relu=True, tile_rows=tile_rows)
    out1 = out1.reshape(n, h, w, c2)

    # conv2 (3x3, pad=1) + bn2 + relu
    out2 = conv3x3_bn_relu(out1, p['w2'], p['b2'])

    # avgpool(stride) + conv3 + bn3 (+ downsample branch) + residual + relu
    if 'wd' in p:
        assert h % stride == 0 and w % stride == 0
        out = fused_pool_conv_residual(out2, x, p['w3'], p['wd'], p['b3'],
                                       k=stride, tile_rows=tile_rows)
        out = out.reshape(n, h // stride, w // stride, cout)
    else:
        out = conv1x1_bn_add_relu(out2.reshape(n * h * w, c2),
                                  x.reshape(n * h * w, cin),
                                  p['w3'], p['b3'], tile_rows=tile_rows)
        out = out.reshape(n, h, w, cout)

    return jnp.transpose(out, (0, 3, 1, 2))                            # NHWC -> NCHW


# --------------------------------------------------------------------------
# Pure-JAX reference (mirrors the PyTorch module, eval-mode BN)
# --------------------------------------------------------------------------
def reference_forward(x, raw, stride):
    def bn(y, gamma, beta, mean, var):
        sh = (1, -1, 1, 1)
        return (y - mean.reshape(sh)) / jnp.sqrt(var.reshape(sh) + EPS) \
            * gamma.reshape(sh) + beta.reshape(sh)

    def conv(y, w, pad):
        return jax.lax.conv_general_dilated(
            y, w, (1, 1), [(pad, pad), (pad, pad)],
            dimension_numbers=('NCHW', 'OIHW', 'NCHW'))

    def avgpool(y, k):
        if k == 1:
            return y
        n, c, h, w = y.shape
        return y.reshape(n, c, h // k, k, w // k, k).mean(axis=(3, 5))

    out = jax.nn.relu(bn(conv(x, raw['conv1'], 0), *raw['bn1']))
    out = jax.nn.relu(bn(conv(out, raw['conv2'], 1), *raw['bn2']))
    out = avgpool(out, stride)
    out = bn(conv(out, raw['conv3'], 0), *raw['bn3'])
    identity = x
    if 'convd' in raw:
        identity = bn(conv(avgpool(x, stride), raw['convd'], 0), *raw['bnd'])
    return jax.nn.relu(out + identity)


if __name__ == "__main__":
    key = jax.random.PRNGKey(0)
    kx, kp, kx2, kp2 = jax.random.split(key, 4)

    # Config A: Bottleneck(inplanes=4, planes=4, stride=2) -> downsample branch.
    N, INPLANES, PLANES, H, W, STRIDE = 2, 4, 4, 16, 16, 2
    x = jax.random.normal(kx, (N, INPLANES, H, W), jnp.float32)        # NCHW
    raw = init_raw_params(kp, INPLANES, PLANES, STRIDE)
    params = kernel_params(raw, STRIDE)

    out = jax.block_until_ready(bottleneck_forward(x, params, STRIDE))
    ref = jax.block_until_ready(reference_forward(x, raw, STRIDE))
    assert out.shape == ref.shape == (N, PLANES * EXPANSION, H // STRIDE, W // STRIDE)
    np.testing.assert_allclose(np.asarray(out), np.asarray(ref), rtol=1e-4, atol=1e-4)

    # Same config with small row tiles -> multi-step grids (exercises the
    # pipelined index_maps rather than single-block calls).
    out_small = jax.block_until_ready(bottleneck_forward(x, params, STRIDE, tile_rows=32))
    np.testing.assert_allclose(np.asarray(out_small), np.asarray(ref), rtol=1e-4, atol=1e-4)

    # Config B: stride=1, inplanes == expansion*planes -> pure identity shortcut.
    N2, INPLANES2, PLANES2, H2, W2 = 2, 16, 4, 8, 8
    x2 = jax.random.normal(kx2, (N2, INPLANES2, H2, W2), jnp.float32)
    raw2 = init_raw_params(kp2, INPLANES2, PLANES2, 1)
    params2 = kernel_params(raw2, 1)
    out2 = jax.block_until_ready(bottleneck_forward(x2, params2, 1))
    ref2 = jax.block_until_ready(reference_forward(x2, raw2, 1))
    assert out2.shape == ref2.shape == (N2, PLANES2 * EXPANSION, H2, W2)
    np.testing.assert_allclose(np.asarray(out2), np.asarray(ref2), rtol=1e-4, atol=1e-4)

    print("KERNEL_OK")
</pallas_src>

<mosaic_0001>
module attributes {stable_mosaic.version = 11 : i64} {
  func.func @_mm_bias_kernel(%arg0: i32, %arg1: memref<512x4xf32, #tpu.memory_space<vmem>>, %arg2: memref<4x4xf32, #tpu.memory_space<vmem>>, %arg3: memref<1x4xf32, #tpu.memory_space<vmem>>, %arg4: memref<512x4xf32, #tpu.memory_space<vmem>>) attributes {dimension_semantics = [#tpu.dimension_semantics<parallel>], iteration_bounds = array<i64: 1>, scalar_prefetch = 0 : i64, scratch_operands = 0 : i64, tpu.core_type = #tpu.core_type<tc>, window_params = [{transform_indices = @transform_0, window_bounds = array<i64: 512, 4>}, {pipeline_mode = #tpu.pipeline_mode<synchronous>, transform_indices = @transform_1, window_bounds = array<i64: 4, 4>}, {pipeline_mode = #tpu.pipeline_mode<synchronous>, transform_indices = @transform_2, window_bounds = array<i64: 1, 4>}, {transform_indices = @transform_3, window_bounds = array<i64: 512, 4>}]} {
    %c0 = arith.constant 0 : index
    %c0_0 = arith.constant 0 : index
    %0 = vector.load %arg1[%c0, %c0_0] : memref<512x4xf32, #tpu.memory_space<vmem>>, vector<512x4xf32>
    %c0_1 = arith.constant 0 : index
    %c0_2 = arith.constant 0 : index
    %1 = vector.load %arg2[%c0_1, %c0_2] : memref<4x4xf32, #tpu.memory_space<vmem>>, vector<4x4xf32>
    %cst = arith.constant dense<0.000000e+00> : vector<512x4xf32>
    %2 = tpu.matmul %0, %1, %cst {dimension_numbers = #tpu.dot_dimension_numbers<[1], [0], [0], [1], [0, 0, 1, 1], [], []>} : vector<512x4xf32>, vector<4x4xf32>, vector<512x4xf32> -> vector<512x4xf32>
    %c0_3 = arith.constant 0 : index
    %c0_4 = arith.constant 0 : index
    %3 = vector.load %arg3[%c0_3, %c0_4] : memref<1x4xf32, #tpu.memory_space<vmem>>, vector<1x4xf32>
    %4 = vector.broadcast %3 : vector<1x4xf32> to vector<512x4xf32>
    %5 = arith.addf %2, %4 : vector<512x4xf32>
    %cst_5 = arith.constant 0.000000e+00 : f32
    %6 = vector.broadcast %cst_5 : f32 to vector<512x4xf32>
    %7 = arith.maximumf %5, %6 : vector<512x4xf32>
    %c0_6 = arith.constant 0 : index
    %c0_7 = arith.constant 0 : index
    %8 = vector.load %arg4[%c0_6, %c0_7] : memref<512x4xf32, #tpu.memory_space<vmem>>, vector<512x4xf32>
    tpu.vector_store %arg4[%c0_6, %c0_7], %7 {strides = array<i32>} : memref<512x4xf32, #tpu.memory_space<vmem>>, vector<512x4xf32>,
    return
  }
  func.func @transform_0(%arg0: i32) -> (i32, i32) {
    %c0_i32 = arith.constant 0 : i32
    %c0_i32_0 = arith.constant 0 : i32
    return %arg0, %c0_i32 : i32, i32
  }
  func.func @transform_1(%arg0: i32) -> (i32, i32) {
    %c0_i32 = arith.constant 0 : i32
    %c0_i32_0 = arith.constant 0 : i32
    %c0_i32_1 = arith.constant 0 : i32
    return %c0_i32, %c0_i32_0 : i32, i32
  }
  func.func @transform_2(%arg0: i32) -> (i32, i32) {
    %c0_i32 = arith.constant 0 : i32
    %c0_i32_0 = arith.constant 0 : i32
    %c0_i32_1 = arith.constant 0 : i32
    return %c0_i32, %c0_i32_0 : i32, i32
  }
  func.func @transform_3(%arg0: i32) -> (i32, i32) {
    %c0_i32 = arith.constant 0 : i32
    %c0_i32_0 = arith.constant 0 : i32
    return %arg0, %c0_i32 : i32, i32
  }
}

</mosaic_0001>

<bundles_post_ra>
// kernel: tpu_custom_call.1
= control target key start
LH: loop header
LB: loop body
LE: loop exit
PB: predicated region body
PF: predicated region fallthrough
CT: control target
= control target key end

     0   :  { %vm279_vm0 = vcmask 1043456   ;;  %vm86_vm1 = vcmask 31744   ;;  %s1635_s1 = inlined_call_operand.vmem [shape: f32[4,4], index: 1, kind: input, shape index: {}]   ;;  %s1636_s0 = inlined_call_operand.vmem [shape: f32[512,4], index: 0, kind: input, shape index: {}]   ;;  %s1637_s2 = inlined_call_operand.vmem [shape: f32[1,4], index: 2, kind: input, shape index: {}]   ;;  %s1638_s3 = inlined_call_operand.vmem [shape: f32[512,4], index: 3, kind: output, shape index: {}]  }
   0x1   :  { %v78_v0 = vld [vmem:[%s1635_s1] sm:$0xf]  ;;  %v15_v3 = vld [vmem:[%s1636_s0 + $0x8] sm:$0xff]  ;;  %v16_v5 = vld [vmem:[%s1636_s0 + $0x10] sm:$0xff] }
   0x2   :  { %v14_v1 = vld [vmem:[%s1636_s0] sm:$0xff]  ;;  %931 = vmatprep.subr.msk.mxu0 %vm279_vm0, %v78_v0  ;;  %1029 = vmatprep.subr.msk.mxu1 %vm279_vm0, %v78_v0  ;;  %v47_v4 = vld [vmem:[%s1636_s0 + $0x108] sm:$0xff]  ;;  %v48_v6 = vld [vmem:[%s1636_s0 + $0x110] sm:$0xff] }
   0x3   :  { %v46_v2 = vld [vmem:[%s1636_s0 + $0x100] sm:$0xff]  ;;  %932 = vmatpush3.msk.msra.mxu0 %vm279_vm0, %v78_v0  ;;  %1030 = vmatpush3.msk.msra.mxu1 %vm279_vm0, %v78_v0  ;;  %v17_v7 = vld [vmem:[%s1636_s0 + $0x18] sm:$0xff]  ;;  %v19_v11 = vld [vmem:[%s1636_s0 + $0x28] sm:$0xff] }
   0x4   :  { %933 = vmatprep.mubr.msk.f32.mxu0 %vm86_vm1, %v14_v1  ;;  %981 = vmatprep.mubr.msk.f32.mxu1 %vm86_vm1, %v46_v2  ;;  %v49_v8 = vld [vmem:[%s1636_s0 + $0x118] sm:$0xff]  ;;  %v18_v9 = vld [vmem:[%s1636_s0 + $0x20] sm:$0xff]  ;;  %v51_v12 = vld [vmem:[%s1636_s0 + $0x128] sm:$0xff] }
   0x5   :  { %934 = vmatmul.mubr.msk.f32.vlgmr.msra.gmra.mrb[0].mxu0 %vm86_vm1, %v15_v3  ;;  %982 = vmatmul.mubr.msk.f32.vlgmr.msra.gmra.mrb[0].mxu1 %vm86_vm1, %v47_v4  ;;  %v50_v10 = vld [vmem:[%s1636_s0 + $0x120] sm:$0xff]  ;;  %v20_v13 = vld [vmem:[%s1636_s0 + $0x30] sm:$0xff]  ;;  %v21_v15 = vld [vmem:[%s1636_s0 + $0x38] sm:$0xff] }
   0x6   :  { %936 = vmatprep.mubr.msk.f32.mxu0 %vm86_vm1, %v16_v5  ;;  %984 = vmatprep.mubr.msk.f32.mxu1 %vm86_vm1, %v48_v6  ;;  %v52_v14 = vld [vmem:[%s1636_s0 + $0x130] sm:$0xff]  ;;  %v53_v16 = vld [vmem:[%s1636_s0 + $0x138] sm:$0xff]  ;;  %v22_v17 = vld [vmem:[%s1636_s0 + $0x40] sm:$0xff] }
   0x7   :  { %v54_v18 = vld [vmem:[%s1636_s0 + $0x140] sm:$0xff]  ;;  %v23_v19 = vld [vmem:[%s1636_s0 + $0x48] sm:$0xff]  ;;  %v24_v21 = vld [vmem:[%s1636_s0 + $0x50] sm:$0xff] }
   0x8   :  { %v55_v20 = vld [vmem:[%s1636_s0 + $0x148] sm:$0xff]  ;;  %v56_v22 = vld [vmem:[%s1636_s0 + $0x150] sm:$0xff]  ;;  %v25_v23 = vld [vmem:[%s1636_s0 + $0x58] sm:$0xff] }
   0x9   :  { %937 = vmatmul.mubr.msk.f32.gmra.mrb[2].mxu0 %vm86_vm1, %v17_v7  ;;  %985 = vmatmul.mubr.msk.f32.gmra.mrb[2].mxu1 %vm86_vm1, %v49_v8  ;;  %v57_v24 = vld [vmem:[%s1636_s0 + $0x158] sm:$0xff]  ;;  %v26_v25 = vld [vmem:[%s1636_s0 + $0x60] sm:$0xff]  ;;  %v27_v27 = vld [vmem:[%s1636_s0 + $0x68] sm:$0xff] }
   0xa   :  { %939 = vmatprep.mubr.msk.f32.mxu0 %vm86_vm1, %v18_v9  ;;  %987 = vmatprep.mubr.msk.f32.mxu1 %vm86_vm1, %v50_v10  ;;  %v58_v26 = vld [vmem:[%s1636_s0 + $0x160] sm:$0xff]  ;;  %v59_v28 = vld [vmem:[%s1636_s0 + $0x168] sm:$0xff]  ;;  %v28_v29 = vld [vmem:[%s1636_s0 + $0x70] sm:$0xff] }
   0xb   :  { %v60_v30 = vld [vmem:[%s1636_s0 + $0x170] sm:$0xff]  ;;  %v29_v31 = vld [vmem:[%s1636_s0 + $0x78] sm:$0xff]  ;;  %v30_v33 = vld [vmem:[%s1636_s0 + $0x80] sm:$0xff] }
   0xc   :  { %v61_v32 = vld [vmem:[%s1636_s0 + $0x178] sm:$0xff]  ;;  %v62_v34 = vld [vmem:[%s1636_s0 + $0x180] sm:$0xff]  ;;  %v31_v35 = vld [vmem:[%s1636_s0 + $0x88] sm:$0xff] }
   0xd   :  { %940 = vmatmul.mubr.msk.f32.gmra.mrb[4].mxu0 %vm86_vm1, %v19_v11  ;;  %988 = vmatmul.mubr.msk.f32.gmra.mrb[4].mxu1 %vm86_vm1, %v51_v12  ;;  %v63_v36 = vld [vmem:[%s1636_s0 + $0x188] sm:$0xff]  ;;  %v32_v37 = vld [vmem:[%s1636_s0 + $0x90] sm:$0xff]  ;;  %v33_v39 = vld [vmem:[%s1636_s0 + $0x98] sm:$0xff] }
   0xe   :  { %942 = vmatprep.mubr.msk.f32.mxu0 %vm86_vm1, %v20_v13  ;;  %990 = vmatprep.mubr.msk.f32.mxu1 %vm86_vm1, %v52_v14  ;;  %v64_v38 = vld [vmem:[%s1636_s0 + $0x190] sm:$0xff]  ;;  %v65_v40 = vld [vmem:[%s1636_s0 + $0x198] sm:$0xff]  ;;  %v34_v41 = vld [vmem:[%s1636_s0 + $0xa0] sm:$0xff] }
   0xf   :  { %v66_v42 = vld [vmem:[%s1636_s0 + $0x1a0] sm:$0xff]  ;;  %v35_v43 = vld [vmem:[%s1636_s0 + $0xa8] sm:$0xff]  ;;  %v36_v45 = vld [vmem:[%s1636_s0 + $0xb0] sm:$0xff] }
  0x10   :  { %v67_v44 = vld [vmem:[%s1636_s0 + $0x1a8] sm:$0xff]  ;;  %v68_v46 = vld [vmem:[%s1636_s0 + $0x1b0] sm:$0xff]  ;;  %v37_v47 = vld [vmem:[%s1636_s0 + $0xb8] sm:$0xff] }
  0x11   :  { %943 = vmatmul.mubr.msk.f32.gmra.mrb[6].mxu0 %vm86_vm1, %v21_v15  ;;  %991 = vmatmul.mubr.msk.f32.gmra.mrb[6].mxu1 %vm86_vm1, %v53_v16  ;;  %v69_v48 = vld [vmem:[%s1636_s0 + $0x1b8] sm:$0xff]  ;;  %v38_v49 = vld [vmem:[%s1636_s0 + $0xc0] sm:$0xff]  ;;  %v39_v51 = vld [vmem:[%s1636_s0 + $0xc8] sm:$0xff] }
  0x12   :  { %945 = vmatprep.mubr.msk.f32.mxu0 %vm86_vm1, %v22_v17  ;;  %993 = vmatprep.mubr.msk.f32.mxu1 %vm86_vm1, %v54_v18  ;;  %v70_v50 = vld [vmem:[%s1636_s0 + $0x1c0] sm:$0xff]  ;;  %v71_v52 = vld [vmem:[%s1636_s0 + $0x1c8] sm:$0xff]  ;;  %v40_v53 = vld [vmem:[%s1636_s0 + $0xd0] sm:$0xff] }
  0x13   :  { %v72_v54 = vld [vmem:[%s1636_s0 + $0x1d0] sm:$0xff]  ;;  %v41_v55 = vld [vmem:[%s1636_s0 + $0xd8] sm:$0xff]  ;;  %v42_v57 = vld [vmem:[%s1636_s0 + $0xe0] sm:$0xff] }
  0x14   :  { %v73_v56 = vld [vmem:[%s1636_s0 + $0x1d8] sm:$0xff]  ;;  %v74_v58 = vld [vmem:[%s1636_s0 + $0x1e0] sm:$0xff]  ;;  %v43_v59 = vld [vmem:[%s1636_s0 + $0xe8] sm:$0xff] }
  0x15   :  { %946 = vmatmul.mubr.msk.f32.gmra.mrb[8].mxu0 %vm86_vm1, %v23_v19  ;;  %994 = vmatmul.mubr.msk.f32.gmra.mrb[8].mxu1 %vm86_vm1, %v55_v20  ;;  %v75_v60 = vld [vmem:[%s1636_s0 + $0x1e8] sm:$0xff]  ;;  %v44_v61 = vld [vmem:[%s1636_s0 + $0xf0] sm:$0xff]  ;;  %v45_v63 = vld [vmem:[%s1636_s0 + $0xf8] sm:$0xff] }
  0x16   :  { %948 = vmatprep.mubr.msk.f32.mxu0 %vm86_vm1, %v24_v21  ;;  %996 = vmatprep.mubr.msk.f32.mxu1 %vm86_vm1, %v56_v22  ;;  %v76_v62 = vld [vmem:[%s1636_s0 + $0x1f0] sm:$0xff]  ;;  %v77_v0 = vld [vmem:[%s1636_s0 + $0x1f8] sm:$0xff]  ;;  %v1313_v1 = vld [vmem:[%s1637_s2] ss:$0 sm:$0xff] }
  0x19   :  { %949 = vmatmul.mubr.msk.f32.gmra.mrb[10].mxu0 %vm86_vm1, %v25_v23  ;;  %997 = vmatmul.mubr.msk.f32.gmra.mrb[10].mxu1 %vm86_vm1, %v57_v24 }
  0x1a   :  { %951 = vmatprep.mubr.msk.f32.mxu0 %vm86_vm1, %v26_v25  ;;  %999 = vmatprep.mubr.msk.f32.mxu1 %vm86_vm1, %v58_v26 }
  0x1d   :  { %952 = vmatmul.mubr.msk.f32.gmra.mrb[12].mxu0 %vm86_vm1, %v27_v27  ;;  %1000 = vmatmul.mubr.msk.f32.gmra.mrb[12].mxu1 %vm86_vm1, %v59_v28 }
  0x1e   :  { %954 = vmatprep.mubr.msk.f32.mxu0 %vm86_vm1, %v28_v29  ;;  %1002 = vmatprep.mubr.msk.f32.mxu1 %vm86_vm1, %v60_v30 }
  0x21   :  { %955 = vmatmul.mubr.msk.f32.gmra.mrb[14].mxu0 %vm86_vm1, %v29_v31  ;;  %1003 = vmatmul.mubr.msk.f32.gmra.mrb[14].mxu1 %vm86_vm1, %v61_v32 }
  0x22   :  { %957 = vmatprep.mubr.msk.f32.mxu0 %vm86_vm1, %v30_v33  ;;  %1005 = vmatprep.mubr.msk.f32.mxu1 %vm86_vm1, %v62_v34 }
  0x25   :  { %958 = vmatmul.mubr.msk.f32.gmra.mrb[16].mxu0 %vm86_vm1, %v31_v35  ;;  %1006 = vmatmul.mubr.msk.f32.gmra.mrb[16].mxu1 %vm86_vm1, %v63_v36 }
  0x26   :  { %960 = vmatprep.mubr.msk.f32.mxu0 %vm86_vm1, %v32_v37  ;;  %1008 = vmatprep.mubr.msk.f32.mxu1 %vm86_vm1, %v64_v38 }
  0x29   :  { %961 = vmatmul.mubr.msk.f32.gmra.mrb[18].mxu0 %vm86_vm1, %v33_v39  ;;  %1009 = vmatmul.mubr.msk.f32.gmra.mrb[18].mxu1 %vm86_vm1, %v65_v40 }
  0x2a   :  { %963 = vmatprep.mubr.msk.f32.mxu0 %vm86_vm1, %v34_v41  ;;  %1011 = vmatprep.mubr.msk.f32.mxu1 %vm86_vm1, %v66_v42 }
  0x2d   :  { %964 = vmatmul.mubr.msk.f32.gmra.mrb[20].mxu0 %vm86_vm1, %v35_v43  ;;  %1012 = vmatmul.mubr.msk.f32.gmra.mrb[20].mxu1 %vm86_vm1, %v67_v44 }
  0x2e   :  { %966 = vmatprep.mubr.msk.f32.mxu0 %vm86_vm1, %v36_v45  ;;  %1014 = vmatprep.mubr.msk.f32.mxu1 %vm86_vm1, %v68_v46 }
  0x31   :  { %967 = vmatmul.mubr.msk.f32.gmra.mrb[22].mxu0 %vm86_vm1, %v37_v47  ;;  %1015 = vmatmul.mubr.msk.f32.gmra.mrb[22].mxu1 %vm86_vm1, %v69_v48 }
  0x32   :  { %969 = vmatprep.mubr.msk.f32.mxu0 %vm86_vm1, %v38_v49  ;;  %1017 = vmatprep.mubr.msk.f32.mxu1 %vm86_vm1, %v70_v50 }
  0x35   :  { %970 = vmatmul.mubr.msk.f32.gmra.mrb[24].mxu0 %vm86_vm1, %v39_v51  ;;  %1018 = vmatmul.mubr.msk.f32.gmra.mrb[24].mxu1 %vm86_vm1, %v71_v52 }
  0x36   :  { %972 = vmatprep.mubr.msk.f32.mxu0 %vm86_vm1, %v40_v53  ;;  %1020 = vmatprep.mubr.msk.f32.mxu1 %vm86_vm1, %v72_v54 }
  0x39   :  { %973 = vmatmul.mubr.msk.f32.gmra.mrb[26].mxu0 %vm86_vm1, %v41_v55  ;;  %1021 = vmatmul.mubr.msk.f32.gmra.mrb[26].mxu1 %vm86_vm1, %v73_v56 }
  0x3a   :  { %975 = vmatprep.mubr.msk.f32.mxu0 %vm86_vm1, %v42_v57  ;;  %1023 = vmatprep.mubr.msk.f32.mxu1 %vm86_vm1, %v74_v58 }
  0x3d   :  { %976 = vmatmul.mubr.msk.f32.gmra.mrb[28].mxu0 %vm86_vm1, %v43_v59  ;;  %1024 = vmatmul.mubr.msk.f32.gmra.mrb[28].mxu1 %vm86_vm1, %v75_v60 }
  0x3e   :  { %978 = vmatprep.mubr.msk.f32.mxu0 %vm86_vm1, %v44_v61  ;;  %1026 = vmatprep.mubr.msk.f32.mxu1 %vm86_vm1, %v76_v62 }
  0x41   :  { %979 = vmatmul.mubr.msk.f32.gmra.mrb[30].mxu0 %vm86_vm1, %v45_v63  ;;  %1027 = vmatmul.mubr.msk.f32.gmra.mrb[30].mxu1 %vm86_vm1, %v77_v0 }
  0xd8   :  { %v935_v2 = vpop.f32.mrb[0].mxu0  ;;  %v983_v3 = vpop.f32.mrb[0].mxu1 }
  0xd9   :  { %v355_v4 = vadd.f32 %v935_v2, %v1313_v1  ;;  %v515_v5 = vadd.f32 %v983_v3, %v1313_v1  ;;  %v349_v6 = vpop.f32.mrb[1].mxu0  ;;  %v509_v7 = vpop.f32.mrb[1].mxu1 }
  0xda   :  { %v350_v8 = vadd.f32 %v1313_v1, %v349_v6  ;;  %v510_v9 = vadd.f32 %v1313_v1, %v509_v7 }
  0xdb   :  { %v669_v10 = vmax.f32 %v355_v4, 0.0  ;;  %v701_v11 = vmax.f32 %v515_v5, 0.0 }
  0xdc   :  { %v668_v12 = vmax.f32 %v350_v8, 0.0  ;;  %v700_v13 = vmax.f32 %v510_v9, 0.0  ;;  %v938_v14 = vpop.f32.mrb[2].mxu0  ;;  %v986_v15 = vpop.f32.mrb[2].mxu1 }
  0xdd   :  { %733 = vst.msk [vmem:[%s1638_s3 + $0x8] sm:$0xff] %vm86_vm1, %v669_v10  ;;  %765 = vst.msk [vmem:[%s1638_s3 + $0x108] sm:$0xff] %vm86_vm1, %v701_v11  ;;  %v365_v16 = vadd.f32 %v938_v14, %v1313_v1  ;;  %v525_v17 = vadd.f32 %v986_v15, %v1313_v1  ;;  %v359_v18 = vpop.f32.mrb[3].mxu0  ;;  %v519_v19 = vpop.f32.mrb[3].mxu1 }
  0xde   :  { %732 = vst.msk [vmem:[%s1638_s3] sm:$0xff] %vm86_vm1, %v668_v12  ;;  %764 = vst.msk [vmem:[%s1638_s3 + $0x100] sm:$0xff] %vm86_vm1, %v700_v13  ;;  %v360_v20 = vadd.f32 %v1313_v1, %v359_v18  ;;  %v520_v21 = vadd.f32 %v1313_v1, %v519_v19 }
  0xdf   :  { %v671_v22 = vmax.f32 %v365_v16, 0.0  ;;  %v703_v23 = vmax.f32 %v525_v17, 0.0 }
  0xe0   :  { %v670_v24 = vmax.f32 %v360_v20, 0.0  ;;  %v702_v25 = vmax.f32 %v520_v21, 0.0  ;;  %v941_v26 = vpop.f32.mrb[4].mxu0  ;;  %v989_v27 = vpop.f32.mrb[4].mxu1 }
  0xe1   :  { %735 = vst.msk [vmem:[%s1638_s3 + $0x18] sm:$0xff] %vm86_vm1, %v671_v22  ;;  %767 = vst.msk [vmem:[%s1638_s3 + $0x118] sm:$0xff] %vm86_vm1, %v703_v23  ;;  %v375_v28 = vadd.f32 %v941_v26, %v1313_v1  ;;  %v535_v29 = vadd.f32 %v989_v27, %v1313_v1  ;;  %v369_v30 = vpop.f32.mrb[5].mxu0  ;;  %v529_v31 = vpop.f32.mrb[5].mxu1 }
  0xe2   :  { %734 = vst.msk [vmem:[%s1638_s3 + $0x10] sm:$0xff] %vm86_vm1, %v670_v24  ;;  %766 = vst.msk [vmem:[%s1638_s3 + $0x110] sm:$0xff] %vm86_vm1, %v702_v25  ;;  %v370_v32 = vadd.f32 %v1313_v1, %v369_v30  ;;  %v530_v33 = vadd.f32 %v1313_v1, %v529_v31 }
  0xe3   :  { %v673_v34 = vmax.f32 %v375_v28, 0.0  ;;  %v705_v35 = vmax.f32 %v535_v29, 0.0 }
  0xe4   :  { %v672_v36 = vmax.f32 %v370_v32, 0.0  ;;  %v704_v37 = vmax.f32 %v530_v33, 0.0  ;;  %v944_v38 = vpop.f32.mrb[6].mxu0  ;;  %v992_v39 = vpop.f32.mrb[6].mxu1 }
  0xe5   :  { %737 = vst.msk [vmem:[%s1638_s3 + $0x28] sm:$0xff] %vm86_vm1, %v673_v34  ;;  %769 = vst.msk [vmem:[%s1638_s3 + $0x128] sm:$0xff] %vm86_vm1, %v705_v35  ;;  %v385_v40 = vadd.f32 %v944_v38, %v1313_v1  ;;  %v545_v41 = vadd.f32 %v992_v39, %v1313_v1  ;;  %v379_v42 = vpop.f32.mrb[7].mxu0  ;;  %v539_v43 = vpop.f32.mrb[7].mxu1 }
  0xe6   :  { %736 = vst.msk [vmem:[%s1638_s3 + $0x20] sm:$0xff] %vm86_vm1, %v672_v36  ;;  %768 = vst.msk [vmem:[%s1638_s3 + $0x120] sm:$0xff] %vm86_vm1, %v704_v37  ;;  %v380_v44 = vadd.f32 %v1313_v1, %v379_v42  ;;  %v540_v45 = vadd.f32 %v1313_v1, %v539_v43 }
  0xe7   :  { %v675_v46 = vmax.f32 %v385_v40, 0.0  ;;  %v707_v47 = vmax.f32 %v545_v41, 0.0 }
  0xe8   :  { %v674_v48 = vmax.f32 %v380_v44, 0.0  ;;  %v706_v49 = vmax.f32 %v540_v45, 0.0  ;;  %v947_v50 = vpop.f32.mrb[8].mxu0  ;;  %v995_v51 = vpop.f32.mrb[8].mxu1 }
  0xe9   :  { %739 = vst.msk [vmem:[%s1638_s3 + $0x38] sm:$0xff] %vm86_vm1, %v675_v46  ;;  %771 = vst.msk [vmem:[%s1638_s3 + $0x138] sm:$0xff] %vm86_vm1, %v707_v47  ;;  %v395_v52 = vadd.f32 %v947_v50, %v1313_v1  ;;  %v555_v53 = vadd.f32 %v995_v51, %v1313_v1  ;;  %v389_v54 = vpop.f32.mrb[9].mxu0  ;;  %v549_v55 = vpop.f32.mrb[9].mxu1 }
  0xea   :  { %738 = vst.msk [vmem:[%s1638_s3 + $0x30] sm:$0xff] %vm86_vm1, %v674_v48  ;;  %770 = vst.msk [vmem:[%s1638_s3 + $0x130] sm:$0xff] %vm86_vm1, %v706_v49  ;;  %v390_v56 = vadd.f32 %v1313_v1, %v389_v54  ;;  %v550_v57 = vadd.f32 %v1313_v1, %v549_v55 }
  0xeb   :  { %v677_v58 = vmax.f32 %v395_v52, 0.0  ;;  %v709_v59 = vmax.f32 %v555_v53, 0.0 }
  0xec   :  { %v676_v60 = vmax.f32 %v390_v56, 0.0  ;;  %v708_v61 = vmax.f32 %v550_v57, 0.0  ;;  %v950_v62 = vpop.f32.mrb[10].mxu0  ;;  %v998_v63 = vpop.f32.mrb[10].mxu1 }
  0xed   :  { %741 = vst.msk [vmem:[%s1638_s3 + $0x48] sm:$0xff] %vm86_vm1, %v677_v58  ;;  %773 = vst.msk [vmem:[%s1638_s3 + $0x148] sm:$0xff] %vm86_vm1, %v709_v59  ;;  %v405_v0 = vadd.f32 %v950_v62, %v1313_v1  ;;  %v565_v2 = vadd.f32 %v998_v63, %v1313_v1  ;;  %v399_v3 = vpop.f32.mrb[11].mxu0  ;;  %v559_v4 = vpop.f32.mrb[11].mxu1 }
  0xee   :  { %740 = vst.msk [vmem:[%s1638_s3 + $0x40] sm:$0xff] %vm86_vm1, %v676_v60  ;;  %772 = vst.msk [vmem:[%s1638_s3 + $0x140] sm:$0xff] %vm86_vm1, %v708_v61  ;;  %v400_v5 = vadd.f32 %v1313_v1, %v399_v3  ;;  %v560_v6 = vadd.f32 %v1313_v1, %v559_v4 }
  0xef   :  { %v679_v7 = vmax.f32 %v405_v0, 0.0  ;;  %v711_v8 = vmax.f32 %v565_v2, 0.0 }
  0xf0   :  { %v678_v9 = vmax.f32 %v400_v5, 0.0  ;;  %v710_v10 = vmax.f32 %v560_v6, 0.0  ;;  %v953_v11 = vpop.f32.mrb[12].mxu0  ;;  %v1001_v12 = vpop.f32.mrb[12].mxu1 }
  0xf1   :  { %743 = vst.msk [vmem:[%s1638_s3 + $0x58] sm:$0xff] %vm86_vm1, %v679_v7  ;;  %775 = vst.msk [vmem:[%s1638_s3 + $0x158] sm:$0xff] %vm86_vm1, %v711_v8  ;;  %v415_v13 = vadd.f32 %v953_v11, %v1313_v1  ;;  %v575_v14 = vadd.f32 %v1001_v12, %v1313_v1  ;;  %v409_v15 = vpop.f32.mrb[13].mxu0  ;;  %v569_v16 = vpop.f32.mrb[13].mxu1 }
  0xf2   :  { %742 = vst.msk [vmem:[%s1638_s3 + $0x50] sm:$0xff] %vm86_vm1, %v678_v9  ;;  %774 = vst.msk [vmem:[%s1638_s3 + $0x150] sm:$0xff] %vm86_vm1, %v710_v10  ;;  %v410_v17 = vadd.f32 %v1313_v1, %v409_v15  ;;  %v570_v18 = vadd.f32 %v1313_v1, %v569_v16 }
  0xf3   :  { %v681_v19 = vmax.f32 %v415_v13, 0.0  ;;  %v713_v20 = vmax.f32 %v575_v14, 0.0 }
  0xf4   :  { %v680_v21 = vmax.f32 %v410_v17, 0.0  ;;  %v712_v22 = vmax.f32 %v570_v18, 0.0  ;;  %v956_v23 = vpop.f32.mrb[14].mxu0  ;;  %v1004_v24 = vpop.f32.mrb[14].mxu1 }
  0xf5   :  { %745 = vst.msk [vmem:[%s1638_s3 + $0x68] sm:$0xff] %vm86_vm1, %v681_v19  ;;  %777 = vst.msk [vmem:[%s1638_s3 + $0x168] sm:$0xff] %vm86_vm1, %v713_v20  ;;  %v425_v25 = vadd.f32 %v956_v23, %v1313_v1  ;;  %v585_v26 = vadd.f32 %v1004_v24, %v1313_v1  ;;  %v419_v27 = vpop.f32.mrb[15].mxu0  ;;  %v579_v28 = vpop.f32.mrb[15].mxu1 }
  0xf6   :  { %744 = vst.msk [vmem:[%s1638_s3 + $0x60] sm:$0xff] %vm86_vm1, %v680_v21  ;;  %776 = vst.msk [vmem:[%s1638_s3 + $0x160] sm:$0xff] %vm86_vm1, %v712_v22  ;;  %v420_v29 = vadd.f32 %v1313_v1, %v419_v27  ;;  %v580_v30 = vadd.f32 %v1313_v1, %v579_v28 }
  0xf7   :  { %v683_v31 = vmax.f32 %v425_v25, 0.0  ;;  %v715_v32 = vmax.f32 %v585_v26, 0.0 }
  0xf8   :  { %v682_v33 = vmax.f32 %v420_v29, 0.0  ;;  %v714_v34 = vmax.f32 %v580_v30, 0.0  ;;  %v959_v35 = vpop.f32.mrb[16].mxu0  ;;  %v1007_v36 = vpop.f32.mrb[16].mxu1 }
  0xf9   :  { %747 = vst.msk [vmem:[%s1638_s3 + $0x78] sm:$0xff] %vm86_vm1, %v683_v31  ;;  %779 = vst.msk [vmem:[%s1638_s3 + $0x178] sm:$0xff] %vm86_vm1, %v715_v32  ;;  %v435_v37 = vadd.f32 %v959_v35, %v1313_v1  ;;  %v595_v38 = vadd.f32 %v1007_v36, %v1313_v1  ;;  %v429_v39 = vpop.f32.mrb[17].mxu0  ;;  %v589_v40 = vpop.f32.mrb[17].mxu1 }
  0xfa   :  { %746 = vst.msk [vmem:[%s1638_s3 + $0x70] sm:$0xff] %vm86_vm1, %v682_v33  ;;  %778 = vst.msk [vmem:[%s1638_s3 + $0x170] sm:$0xff] %vm86_vm1, %v714_v34  ;;  %v430_v41 = vadd.f32 %v1313_v1, %v429_v39  ;;  %v590_v42 = vadd.f32 %v1313_v1, %v589_v40 }
  0xfb   :  { %v685_v43 = vmax.f32 %v435_v37, 0.0  ;;  %v717_v44 = vmax.f32 %v595_v38, 0.0 }
  0xfc   :  { %v684_v45 = vmax.f32 %v430_v41, 0.0  ;;  %v716_v46 = vmax.f32 %v590_v42, 0.0  ;;  %v962_v47 = vpop.f32.mrb[18].mxu0  ;;  %v1010_v48 = vpop.f32.mrb[18].mxu1 }
  0xfd   :  { %749 = vst.msk [vmem:[%s1638_s3 + $0x88] sm:$0xff] %vm86_vm1, %v685_v43  ;;  %781 = vst.msk [vmem:[%s1638_s3 + $0x188] sm:$0xff] %vm86_vm1, %v717_v44  ;;  %v445_v49 = vadd.f32 %v962_v47, %v1313_v1  ;;  %v605_v50 = vadd.f32 %v1010_v48, %v1313_v1  ;;  %v439_v51 = vpop.f32.mrb[19].mxu0  ;;  %v599_v52 = vpop.f32.mrb[19].mxu1 }
  0xfe   :  { %748 = vst.msk [vmem:[%s1638_s3 + $0x80] sm:$0xff] %vm86_vm1, %v684_v45  ;;  %780 = vst.msk [vmem:[%s1638_s3 + $0x180] sm:$0xff] %vm86_vm1, %v716_v46  ;;  %v440_v53 = vadd.f32 %v1313_v1, %v439_v51  ;;  %v600_v54 = vadd.f32 %v1313_v1, %v599_v52 }
  0xff   :  { %v687_v55 = vmax.f32 %v445_v49, 0.0  ;;  %v719_v56 = vmax.f32 %v605_v50, 0.0 }
 0x100   :  { %v686_v57 = vmax.f32 %v440_v53, 0.0  ;;  %v718_v58 = vmax.f32 %v600_v54, 0.0  ;;  %v965_v59 = vpop.f32.mrb[20].mxu0  ;;  %v1013_v60 = vpop.f32.mrb[20].mxu1 }
 0x101   :  { %751 = vst.msk [vmem:[%s1638_s3 + $0x98] sm:$0xff] %vm86_vm1, %v687_v55  ;;  %783 = vst.msk [vmem:[%s1638_s3 + $0x198] sm:$0xff] %vm86_vm1, %v719_v56  ;;  %v455_v61 = vadd.f32 %v965_v59, %v1313_v1  ;;  %v615_v62 = vadd.f32 %v1013_v60, %v1313_v1  ;;  %v449_v63 = vpop.f32.mrb[21].mxu0  ;;  %v609_v0 = vpop.f32.mrb[21].mxu1 }
 0x102   :  { %750 = vst.msk [vmem:[%s1638_s3 + $0x90] sm:$0xff] %vm86_vm1, %v686_v57  ;;  %782 = vst.msk [vmem:[%s1638_s3 + $0x190] sm:$0xff] %vm86_vm1, %v718_v58  ;;  %v450_v2 = vadd.f32 %v1313_v1, %v449_v63  ;;  %v610_v3 = vadd.f32 %v1313_v1, %v609_v0 }
 0x103   :  { %v689_v4 = vmax.f32 %v455_v61, 0.0  ;;  %v721_v5 = vmax.f32 %v615_v62, 0.0 }
 0x104   :  { %v688_v6 = vmax.f32 %v450_v2, 0.0  ;;  %v720_v7 = vmax.f32 %v610_v3, 0.0  ;;  %v968_v8 = vpop.f32.mrb[22].mxu0  ;;  %v1016_v9 = vpop.f32.mrb[22].mxu1 }
 0x105   :  { %753 = vst.msk [vmem:[%s1638_s3 + $0xa8] sm:$0xff] %vm86_vm1, %v689_v4  ;;  %785 = vst.msk [vmem:[%s1638_s3 + $0x1a8] sm:$0xff] %vm86_vm1, %v721_v5  ;;  %v465_v10 = vadd.f32 %v968_v8, %v1313_v1  ;;  %v625_v11 = vadd.f32 %v1016_v9, %v1313_v1  ;;  %v459_v12 = vpop.f32.mrb[23].mxu0  ;;  %v619_v13 = vpop.f32.mrb[23].mxu1 }
 0x106   :  { %752 = vst.msk [vmem:[%s1638_s3 + $0xa0] sm:$0xff] %vm86_vm1, %v688_v6  ;;  %784 = vst.msk [vmem:[%s1638_s3 + $0x1a0] sm:$0xff] %vm86_vm1, %v720_v7  ;;  %v460_v14 = vadd.f32 %v1313_v1, %v459_v12  ;;  %v620_v15 = vadd.f32 %v1313_v1, %v619_v13 }
 0x107   :  { %v691_v16 = vmax.f32 %v465_v10, 0.0  ;;  %v723_v17 = vmax.f32 %v625_v11, 0.0 }
 0x108   :  { %v690_v18 = vmax.f32 %v460_v14, 0.0  ;;  %v722_v19 = vmax.f32 %v620_v15, 0.0  ;;  %v971_v20 = vpop.f32.mrb[24].mxu0  ;;  %v1019_v21 = vpop.f32.mrb[24].mxu1 }
 0x109   :  { %755 = vst.msk [vmem:[%s1638_s3 + $0xb8] sm:$0xff] %vm86_vm1, %v691_v16  ;;  %787 = vst.msk [vmem:[%s1638_s3 + $0x1b8] sm:$0xff] %vm86_vm1, %v723_v17  ;;  %v475_v22 = vadd.f32 %v971_v20, %v1313_v1  ;;  %v635_v23 = vadd.f32 %v1019_v21, %v1313_v1  ;;  %v469_v24 = vpop.f32.mrb[25].mxu0  ;;  %v629_v25 = vpop.f32.mrb[25].mxu1 }
 0x10a   :  { %754 = vst.msk [vmem:[%s1638_s3 + $0xb0] sm:$0xff] %vm86_vm1, %v690_v18  ;;  %786 = vst.msk [vmem:[%s1638_s3 + $0x1b0] sm:$0xff] %vm86_vm1, %v722_v19  ;;  %v470_v26 = vadd.f32 %v1313_v1, %v469_v24  ;;  %v630_v27 = vadd.f32 %v1313_v1, %v629_v25 }
 0x10b   :  { %v693_v28 = vmax.f32 %v475_v22, 0.0  ;;  %v725_v29 = vmax.f32 %v635_v23, 0.0 }
 0x10c   :  { %v692_v30 = vmax.f32 %v470_v26, 0.0  ;;  %v724_v31 = vmax.f32 %v630_v27, 0.0  ;;  %v974_v32 = vpop.f32.mrb[26].mxu0  ;;  %v1022_v33 = vpop.f32.mrb[26].mxu1 }
 0x10d   :  { %757 = vst.msk [vmem:[%s1638_s3 + $0xc8] sm:$0xff] %vm86_vm1, %v693_v28  ;;  %789 = vst.msk [vmem:[%s1638_s3 + $0x1c8] sm:$0xff] %vm86_vm1, %v725_v29  ;;  %v485_v34 = vadd.f32 %v974_v32, %v1313_v1  ;;  %v645_v35 = vadd.f32 %v1022_v33, %v1313_v1  ;;  %v479_v36 = vpop.f32.mrb[27].mxu0  ;;  %v639_v37 = vpop.f32.mrb[27].mxu1 }
 0x10e   :  { %756 = vst.msk [vmem:[%s1638_s3 + $0xc0] sm:$0xff] %vm86_vm1, %v692_v30  ;;  %788 = vst.msk [vmem:[%s1638_s3 + $0x1c0] sm:$0xff] %vm86_vm1, %v724_v31  ;;  %v480_v38 = vadd.f32 %v1313_v1, %v479_v36  ;;  %v640_v39 = vadd.f32 %v1313_v1, %v639_v37 }
 0x10f   :  { %v695_v40 = vmax.f32 %v485_v34, 0.0  ;;  %v727_v41 = vmax.f32 %v645_v35, 0.0 }
 0x110   :  { %v694_v42 = vmax.f32 %v480_v38, 0.0  ;;  %v726_v43 = vmax.f32 %v640_v39, 0.0  ;;  %v977_v44 = vpop.f32.mrb[28].mxu0  ;;  %v1025_v45 = vpop.f32.mrb[28].mxu1 }
 0x111   :  { %759 = vst.msk [vmem:[%s1638_s3 + $0xd8] sm:$0xff] %vm86_vm1, %v695_v40  ;;  %791 = vst.msk [vmem:[%s1638_s3 + $0x1d8] sm:$0xff] %vm86_vm1, %v727_v41  ;;  %v495_v46 = vadd.f32 %v977_v44, %v1313_v1  ;;  %v655_v47 = vadd.f32 %v1025_v45, %v1313_v1  ;;  %v489_v48 = vpop.f32.mrb[29].mxu0  ;;  %v649_v49 = vpop.f32.mrb[29].mxu1 }
 0x112   :  { %758 = vst.msk [vmem:[%s1638_s3 + $0xd0] sm:$0xff] %vm86_vm1, %v694_v42  ;;  %790 = vst.msk [vmem:[%s1638_s3 + $0x1d0] sm:$0xff] %vm86_vm1, %v726_v43  ;;  %v490_v50 = vadd.f32 %v1313_v1, %v489_v48  ;;  %v650_v51 = vadd.f32 %v1313_v1, %v649_v49 }
 0x113   :  { %v697_v52 = vmax.f32 %v495_v46, 0.0  ;;  %v729_v53 = vmax.f32 %v655_v47, 0.0 }
 0x114   :  { %v696_v54 = vmax.f32 %v490_v50, 0.0  ;;  %v728_v55 = vmax.f32 %v650_v51, 0.0  ;;  %v980_v56 = vpop.f32.mrb[30].mxu0  ;;  %v1028_v57 = vpop.f32.mrb[30].mxu1 }
 0x115   :  { %761 = vst.msk [vmem:[%s1638_s3 + $0xe8] sm:$0xff] %vm86_vm1, %v697_v52  ;;  %793 = vst.msk [vmem:[%s1638_s3 + $0x1e8] sm:$0xff] %vm86_vm1, %v729_v53  ;;  %v505_v58 = vadd.f32 %v980_v56, %v1313_v1  ;;  %v665_v59 = vadd.f32 %v1028_v57, %v1313_v1  ;;  %v499_v60 = vpop.f32.mrb[31].mxu0  ;;  %v659_v61 = vpop.f32.mrb[31].mxu1 }
 0x116   :  { %760 = vst.msk [vmem:[%s1638_s3 + $0xe0] sm:$0xff] %vm86_vm1, %v696_v54  ;;  %792 = vst.msk [vmem:[%s1638_s3 + $0x1e0] sm:$0xff] %vm86_vm1, %v728_v55  ;;  %v500_v62 = vadd.f32 %v1313_v1, %v499_v60  ;;  %v660_v63 = vadd.f32 %v1313_v1, %v659_v61 }
 0x117   :  { %v699_v0 = vmax.f32 %v505_v58, 0.0  ;;  %v731_v2 = vmax.f32 %v665_v59, 0.0 }
 0x118   :  { %v698_v3 = vmax.f32 %v500_v62, 0.0  ;;  %v730_v4 = vmax.f32 %v660_v63, 0.0 }
 0x119   :  { %763 = vst.msk [vmem:[%s1638_s3 + $0xf8] sm:$0xff] %vm86_vm1, %v699_v0  ;;  %795 = vst.msk [vmem:[%s1638_s3 + $0x1f8] sm:$0xff] %vm86_vm1, %v731_v2 }
 0x11a   :  { %762 = vst.msk [vmem:[%s1638_s3 + $0xf0] sm:$0xff] %vm86_vm1, %v698_v3  ;;  %794 = vst.msk [vmem:[%s1638_s3 + $0x1f0] sm:$0xff] %vm86_vm1, %v730_v4 }

</bundles_post_ra>
